<compile_context>
chip_gen: v5e
topology: v5e:2x2
jax: 0.10.0
libtpu: 0.0.40
codegen_flags: <defaults>
</compile_context>

<pallas_src>
import functools

import jax
import jax.numpy as jnp
from jax import lax
from jax.experimental import pallas as pl
from jax.experimental.pallas import tpu as pltpu


# ---------------------------------------------------------------------------
# Tuning knobs (conservative across v5e / v6e / v7x).
# ---------------------------------------------------------------------------
_VMEM_BLOCK_BUDGET = 20 * 1024 * 1024   # padded in+out blocks (double-buffered) + sel
_VMEM_LIMIT_BYTES = 32 * 1024 * 1024    # scoped-VMEM limit handed to Mosaic
_FLAT_MAX_LANES = 1024                  # single-matmul path when H*W <= this
_LANE = 128


def _round_up(a, b):
    return -(-a // b) * b


def _sublane_tile(itemsize):
    # f32 -> 8 sublanes per native tile, bf16/f16 -> 16, int8/fp8 -> 32.
    return 8 * max(1, 4 // itemsize)


# ---------------------------------------------------------------------------
# Kernels.
# ---------------------------------------------------------------------------
def _reorg_flat_kernel(sel_ref, x_ref, o_ref):
    """Whole-row lane permutation: one MXU matmul, lane-dense load & store."""
    y = jnp.dot(x_ref[...], sel_ref[...],
                precision=lax.Precision.HIGHEST,
                preferred_element_type=jnp.float32)
    o_ref[...] = y.astype(o_ref.dtype)


def _reorg_tiled_kernel(sel_ref, x_ref, o_ref, *, stride, W):
    """Fallback for large H*W: per-H-phase (W, W) lane de-interleave matmul."""
    s = stride
    oW = W // s
    TN, oH, _ = x_ref.shape
    sel = sel_ref[...]                                   # (W, W) 0/1, VMEM resident
    for i in range(s):                                   # H phase: static lane slice
        xi = x_ref[:, :, i * W:(i + 1) * W]              # (TN, oH, W)
        yi = jnp.dot(xi.reshape(TN * oH, W), sel,
                     precision=lax.Precision.HIGHEST,
                     preferred_element_type=jnp.float32).astype(o_ref.dtype)
        for j in range(s):                               # W phase: lanes already split
            part = yi[:, j * oW:(j + 1) * oW].reshape(TN, oH, oW)
            o_ref[:, i * s + j, :, :] = part


# ---------------------------------------------------------------------------
# Selection-matrix builders (built once in the wrapper, stay VMEM-resident).
# ---------------------------------------------------------------------------
def _flat_perm_matrix(H, W, stride, dtype):
    """sel[p, q] = 1 iff flat output lane q reads flat input lane p (per B*C row)."""
    s = stride
    oH, oW = H // s, W // s
    HW = H * W
    q = jnp.arange(HW, dtype=jnp.int32)
    c, rem = q // (oH * oW), q % (oH * oW)
    oh, ow = rem // oW, rem % oW
    i, j = c // s, c % s
    p_src = (oh * s + i) * W + ow * s + j
    p = jnp.arange(HW, dtype=jnp.int32)[:, None]
    return (p == p_src[None, :]).astype(dtype)


def _col_perm_matrix(W, stride, dtype):
    """sel[w, j*oW + ow] = 1 iff w == ow*stride + j (lane de-interleave of one row)."""
    s = stride
    oW = W // s
    col = jnp.arange(W, dtype=jnp.int32)
    j, ow = col // oW, col % oW
    w = jnp.arange(W, dtype=jnp.int32)[:, None]
    return (w == (ow * s + j)[None, :]).astype(dtype)


# ---------------------------------------------------------------------------
# Grid planner for the fused B*C axis.
# ---------------------------------------------------------------------------
def _plan_grid(N, per_row_bytes, budget_bytes, sub_tile):
    """Return (block_rows, grid_steps, padded_N).

    `per_row_bytes` is the padded, double-buffered VMEM cost of one fused row
    (input + output).  Prefers >= 2 and an even number of grid steps (both v7x
    TensorCores get work) as long as the implied zero padding stays <= 12.5%.
    """
    if N <= sub_tile:
        return N, 1, N

    def mk(steps):
        tn = _round_up(pl.cdiv(N, steps), sub_tile)      # sublane-aligned blocks
        steps = pl.cdiv(N, tn)
        return tn, steps, steps * tn

    max_tn = min(N, max(1, budget_bytes // per_row_bytes))
    tn, steps, n_pad = mk(pl.cdiv(N, max_tn))

    want = 2 if steps == 1 else (steps + 1 if steps % 2 else steps)
    if want != steps:
        tn2, steps2, n_pad2 = mk(want)
        if steps2 % 2 == 0 and (n_pad2 - N) * 8 <= N:
            tn, steps, n_pad = tn2, steps2, n_pad2
    return tn, steps, n_pad


# ---------------------------------------------------------------------------
# Public wrapper.
# ---------------------------------------------------------------------------
def reorg_layer(x, stride):
    """Pallas TPU equivalent of the PyTorch reorg_layer.forward (NCHW)."""
    B, C, H, W = x.shape
    s = int(stride)
    assert H % s == 0 and W % s == 0, "spatial dims must be divisible by stride"
    if s == 1:
        return x

    oH, oW = H // s, W // s
    s2 = s * s
    N = B * C

    if not jnp.issubdtype(x.dtype, jnp.floating):
        # TODO(synk): integer dtypes need a non-MXU de-interleave path (v7x MXU has no
        # integer support); permute via XLA for now.
        y = x.reshape(B, C, oH, s, oW, s)
        return jnp.transpose(y, (0, 1, 3, 5, 2, 4)).reshape(B, C * s2, oH, oW)

    itemsize = jnp.dtype(x.dtype).itemsize
    sub = _sublane_tile(itemsize)
    use_flat = (H * W) <= _FLAT_MAX_LANES

    # Padding-aware per-row footprint (lane dim rounded to 128, sublanes to dtype tile).
    if use_flat:
        HW = H * W
        sel = _flat_perm_matrix(H, W, s, x.dtype)
        xf = x.reshape(N, HW)                                     # free reshape
        row_bytes = 2 * _round_up(HW, _LANE) * itemsize           # input row + output row
        sel_bytes = _round_up(HW, sub) * _round_up(HW, _LANE) * itemsize
    else:
        sel = _col_perm_matrix(W, s, x.dtype)
        xf = x.reshape(N, oH, s * W)                              # free reshape
        in_row = _round_up(oH, sub) * _round_up(s * W, _LANE) * itemsize
        out_row = s2 * _round_up(oH, sub) * _round_up(oW, _LANE) * itemsize
        row_bytes = in_row + out_row
        sel_bytes = _round_up(W, sub) * _round_up(W, _LANE) * itemsize

    per_row = 2 * row_bytes                   # x2: double-buffered input/output blocks
    budget = max(per_row, _VMEM_BLOCK_BUDGET - 2 * sel_bytes)
    TN, steps, n_pad = _plan_grid(N, per_row, budget, sub)

    if n_pad != N:                            # awkward B*C: pad instead of TN=1 blocks
        pad = [(0, n_pad - N)] + [(0, 0)] * (xf.ndim - 1)
        xf = jnp.pad(xf, pad)

    compiler_params = pltpu.CompilerParams(
        dimension_semantics=("parallel",),
        vmem_limit_bytes=_VMEM_LIMIT_BYTES)

    if use_flat:
        out = pl.pallas_call(
            _reorg_flat_kernel,
            out_shape=jax.ShapeDtypeStruct((n_pad, HW), x.dtype),
            grid=(steps,),
            in_specs=[
                pl.BlockSpec((HW, HW), lambda n: (0, 0)),   # resident permutation matrix
                pl.BlockSpec((TN, HW), lambda n: (n, 0)),
            ],
            out_specs=pl.BlockSpec((TN, HW), lambda n: (n, 0)),
            compiler_params=compiler_params,
        )(sel, xf)
    else:
        out = pl.pallas_call(
            functools.partial(_reorg_tiled_kernel, stride=s, W=W),
            out_shape=jax.ShapeDtypeStruct((n_pad, s2, oH, oW), x.dtype),
            grid=(steps,),
            in_specs=[
                pl.BlockSpec((W, W), lambda n: (0, 0)),     # resident permutation matrix
                pl.BlockSpec((TN, oH, s * W), lambda n: (n, 0, 0)),
            ],
            out_specs=pl.BlockSpec((TN, s2, oH, oW), lambda n: (n, 0, 0, 0)),
            compiler_params=compiler_params,
        )(sel, xf)

    # Free contiguous reshape back to NCHW ordering.
    return out[:N].reshape(B, C * s2, oH, oW)


def _reorg_reference(x, stride):
    B, C, H, W = x.shape
    oH, oW = H // stride, W // stride
    y = x.reshape(B, C, oH, stride, oW, stride)
    y = jnp.transpose(y, (0, 1, 3, 5, 2, 4))
    return y.reshape(B, C * stride * stride, oH, oW)


if __name__ == "__main__":
    key = jax.random.PRNGKey(0)
    k0, k1 = jax.random.split(key)

    # Primary test: matches the module's typical use (stride=2).
    stride = 2
    B, C, H, W = 2, 4, 16, 16
    x = jax.random.normal(k0, (B, C, H, W), dtype=jnp.float32)

    out = jax.jit(functools.partial(reorg_layer, stride=stride))(x)
    out = jax.block_until_ready(out)
    ref = _reorg_reference(x, stride)

    assert out.shape == (B, C * stride * stride, H // stride, W // stride), out.shape
    assert out.dtype == x.dtype
    assert jnp.array_equal(out, ref), "mismatch vs reference (stride=2)"

    # Secondary check: different stride exercises the general permutation matrix.
    stride2 = 4
    x2 = jax.random.normal(k1, (2, 2, 16, 16), dtype=jnp.float32)
    out2 = jax.block_until_ready(jax.jit(functools.partial(reorg_layer, stride=stride2))(x2))
    ref2 = _reorg_reference(x2, stride2)
    assert jnp.array_equal(out2, ref2), "mismatch vs reference (stride=4)"

    print("KERNEL_OK")
</pallas_src>

<mosaic_0001>
module attributes {stable_mosaic.version = 11 : i64} {
  func.func @_reorg_flat_kernel(%arg0: i32, %arg1: memref<256x256xf32, #tpu.memory_space<vmem>>, %arg2: memref<8x256xf32, #tpu.memory_space<vmem>>, %arg3: memref<8x256xf32, #tpu.memory_space<vmem>>) attributes {dimension_semantics = [#tpu.dimension_semantics<parallel>], iteration_bounds = array<i64: 1>, scalar_prefetch = 0 : i64, scratch_operands = 0 : i64, tpu.core_type = #tpu.core_type<tc>, window_params = [{pipeline_mode = #tpu.pipeline_mode<synchronous>, transform_indices = @transform_0, window_bounds = array<i64: 256, 256>}, {transform_indices = @transform_1, window_bounds = array<i64: 8, 256>}, {transform_indices = @transform_2, window_bounds = array<i64: 8, 256>}]} {
    %c0 = arith.constant 0 : index
    %c0_0 = arith.constant 0 : index
    %0 = vector.load %arg2[%c0, %c0_0] : memref<8x256xf32, #tpu.memory_space<vmem>>, vector<8x256xf32>
    %c0_1 = arith.constant 0 : index
    %c0_2 = arith.constant 0 : index
    %1 = vector.load %arg1[%c0_1, %c0_2] : memref<256x256xf32, #tpu.memory_space<vmem>>, vector<256x256xf32>
    %cst = arith.constant dense<0.000000e+00> : vector<8x256xf32>
    %2 = tpu.matmul %0, %1, %cst {dimension_numbers = #tpu.dot_dimension_numbers<[1], [0], [0], [1], [0, 0, 1, 1], [], []>, precision = #tpu.contract_precision<fp32>} : vector<8x256xf32>, vector<256x256xf32>, vector<8x256xf32> -> vector<8x256xf32>
    %c0_3 = arith.constant 0 : index
    %c0_4 = arith.constant 0 : index
    %3 = vector.load %arg3[%c0_3, %c0_4] : memref<8x256xf32, #tpu.memory_space<vmem>>, vector<8x256xf32>
    tpu.vector_store %arg3[%c0_3, %c0_4], %2 {strides = array<i32>} : memref<8x256xf32, #tpu.memory_space<vmem>>, vector<8x256xf32>,
    return
  }
  func.func @transform_0(%arg0: i32) -> (i32, i32) {
    %c0_i32 = arith.constant 0 : i32
    %c0_i32_0 = arith.constant 0 : i32
    %c0_i32_1 = arith.constant 0 : i32
    return %c0_i32, %c0_i32_0 : i32, i32
  }
  func.func @transform_1(%arg0: i32) -> (i32, i32) {
    %c0_i32 = arith.constant 0 : i32
    %c0_i32_0 = arith.constant 0 : i32
    return %arg0, %c0_i32 : i32, i32
  }
  func.func @transform_2(%arg0: i32) -> (i32, i32) {
    %c0_i32 = arith.constant 0 : i32
    %c0_i32_0 = arith.constant 0 : i32
    return %arg0, %c0_i32 : i32, i32
  }
}

</mosaic_0001>

<bundles_post_ra>
// kernel: reorg_layer.1
= control target key start
LH: loop header
LB: loop body
LE: loop exit
PB: predicated region body
PF: predicated region fallthrough
CT: control target
= control target key end

     0   :  { %s2674_s0 = inlined_call_operand.vmem [shape: f32[256,256], index: 0, kind: input, shape index: {}]   ;;  %s2675_s1 = inlined_call_operand.vmem [shape: f32[8,256], index: 1, kind: input, shape index: {}]   ;;  %s2676_s2 = inlined_call_operand.vmem [shape: f32[8,256], index: 2, kind: output, shape index: {}]  }
   0x1   :  { %v43_v0 = vld [vmem:[%s2674_s0 + $0xf0] sm:$0xff]  ;;  %v41_v1 = vld [vmem:[%s2674_s0 + $0xe0] sm:$0xff] }
   0x2   :  { %v39_v2 = vld [vmem:[%s2674_s0 + $0xd0] sm:$0xff]  ;;  %v1471_v3 = vand.u32 4294901760, %v43_v0  ;;  %v1473_v4 = vand.u32 4294901760, %v41_v1  ;;  %v37_v6 = vld [vmem:[%s2674_s0 + $0xc0] sm:$0xff] }
   0x3   :  { %v1475_v5 = vand.u32 4294901760, %v39_v2  ;;  %v35_v7 = vld [vmem:[%s2674_s0 + $0xb0] sm:$0xff]  ;;  %v33_v8 = vld [vmem:[%s2674_s0 + $0xa0] sm:$0xff]  ;;  %v1486_v9 = vand.u32 4294901760, %v37_v6 }
   0x4   :  { %v1488_v10 = vand.u32 4294901760, %v35_v7  ;;  %v1490_v11 = vand.u32 4294901760, %v33_v8  ;;  %v31_v12 = vld [vmem:[%s2674_s0 + $0x90] sm:$0xff]  ;;  %v29_v13 = vld [vmem:[%s2674_s0 + $0x80] sm:$0xff]  ;;  %78 = vmatpush.msra.mxu0 %v1471_v3  ;;  %v1500_v14 = vsub.f32 %v43_v0, %v1471_v3  ;;  %v1503_v15 = vsub.f32 %v41_v1, %v1473_v4  ;;  %274 = vmatpush.msra.mxu3 %v1471_v3 }
   0x5   :  { %v1507_v16 = vsub.f32 %v39_v2, %v1475_v5  ;;  %v1509_v17 = vand.u32 4294901760, %v31_v12  ;;  %v27_v18 = vld [vmem:[%s2674_s0 + $0x70] sm:$0xff]  ;;  %v1515_v19 = vsub.f32 %v37_v6, %v1486_v9  ;;  %v1528_v25 = vand.u32 4294901760, %v29_v13  ;;  %v25_v26 = vld [vmem:[%s2674_s0 + $0x60] sm:$0xff] }
   0x6   :  { %v1518_v20 = vsub.f32 %v35_v7, %v1488_v10  ;;  %v1521_v21 = vsub.f32 %v33_v8, %v1490_v11  ;;  %80 = vmatpush.msra.mxu0 %v1473_v4  ;;  %221 = vmatpush.msra.mxu2 %v1500_v14  ;;  %v120_v22 = vand.u32 4294901760, %v1500_v14  ;;  %v2692_v23 = vand.u32 4294901760, %v1503_v15  ;;  %v23_v34 = vld [vmem:[%s2674_s0 + $0x50] sm:$0xff]  ;;  %v21_v42 = vld [vmem:[%s2674_s0 + $0x40] sm:$0xff] }
   0x7   :  { %v2690_v24 = vand.u32 4294901760, %v1507_v16  ;;  %276 = vmatpush.msra.mxu3 %v1473_v4  ;;  %v2688_v27 = vand.u32 4294901760, %v1515_v19  ;;  %v1535_v28 = vand.u32 4294901760, %v27_v18  ;;  %v1538_v29 = vsub.f32 %v31_v12, %v1509_v17  ;;  %v19_v48 = vld [vmem:[%s2674_s0 + $0x30] sm:$0xff]  ;;  %v17_v54 = vld [vmem:[%s2674_s0 + $0x20] sm:$0xff] }
   0x8   :  { %82 = vmatpush.msra.mxu0 %v1475_v5  ;;  %224 = vmatpush.msra.mxu2 %v1503_v15  ;;  %v121_v30 = vsub.f32 %v1500_v14, %v120_v22  ;;  %v127_v31 = vsub.f32 %v1503_v15, %v2692_v23  ;;  %v2686_v33 = vand.u32 4294901760, %v1518_v20  ;;  %v1556_v35 = vand.u32 4294901760, %v25_v26  ;;  %v75_v59 = vld [vmem:[%s2674_s0 + $0x1f0] sm:$0xff]  ;;  %v13_v2 = vld [vmem:[%s2674_s0] sm:$0xff] }
   0x9   :  { %v133_v32 = vsub.f32 %v1507_v16, %v2690_v24  ;;  %278 = vmatpush.msra.mxu3 %v1475_v5  ;;  %v2685_v36 = vand.u32 4294901760, %v1521_v21  ;;  %v139_v39 = vsub.f32 %v1515_v19, %v2688_v27  ;;  %v1565_v40 = vsub.f32 %v29_v13, %v1528_v25  ;;  %v15_v61 = vld [vmem:[%s2674_s0 + $0x10] sm:$0xff]  ;;  %v73_v6 = vld [vmem:[%s2674_s0 + $0x1e0] sm:$0xff] }
   0xa   :  { %84 = vmatpush.msra.mxu0 %v1486_v9  ;;  %v122_v37 = vand.u32 4294901760, %v121_v30  ;;  %227 = vmatpush.msra.mxu2 %v1507_v16  ;;  %v128_v38 = vand.u32 4294901760, %v127_v31  ;;  %v1568_v41 = vand.u32 4294901760, %v23_v34  ;;  %v145_v44 = vsub.f32 %v1518_v20, %v2686_v33 }
   0xb   :  { %280 = vmatpush.msra.mxu3 %v1486_v9  ;;  %v134_v43 = vand.u32 4294901760, %v133_v32  ;;  %v2683_v45 = vand.u32 4294901760, %v1538_v29  ;;  %v1579_v46 = vsub.f32 %v27_v18, %v1535_v28  ;;  %v151_v47 = vsub.f32 %v1521_v21, %v2685_v36  ;;  %v71_v32 = vld [vmem:[%s2674_s0 + $0x1d0] sm:$0xff] }
   0xc   :  { %86 = vmatpush.msra.mxu0 %v1488_v10  ;;  %123 = vmatpush.msra.mxu1 %v122_v37  ;;  %v140_v49 = vand.u32 4294901760, %v139_v39  ;;  %v1590_v50 = vand.u32 4294901760, %v21_v42  ;;  %v2682_v51 = vand.u32 4294901760, %v1565_v40  ;;  %v1594_v52 = vsub.f32 %v25_v26, %v1556_v35 }
   0xd   :  { %230 = vmatpush.msra.mxu2 %v1515_v19  ;;  %282 = vmatpush.msra.mxu3 %v1488_v10  ;;  %v1599_v53 = vsub.f32 %v23_v34, %v1568_v41  ;;  %v146_v55 = vand.u32 4294901760, %v145_v44  ;;  %v157_v56 = vsub.f32 %v1538_v29, %v2683_v45  ;;  %v1608_v57 = vand.u32 4294901760, %v19_v48  ;;  %v69_v44 = vld [vmem:[%s2674_s0 + $0x1c0] sm:$0xff] }
   0xe   :  { %88 = vmatpush.msra.mxu0 %v1490_v11  ;;  %129 = vmatpush.msra.mxu1 %v128_v38  ;;  %v2681_v58 = vand.u32 4294901760, %v1579_v46  ;;  %v152_v60 = vand.u32 4294901760, %v151_v47  ;;  %v163_v62 = vsub.f32 %v1565_v40, %v2682_v51  ;;  %v1623_v63 = vand.u32 4294901760, %v17_v54  ;;  %v61_v45 = vld [vmem:[%s2674_s0 + $0x180] sm:$0xff] }
   0xf   :  { %233 = vmatpush.msra.mxu2 %v1518_v20  ;;  %284 = vmatpush.msra.mxu3 %v1490_v11  ;;  %v2679_v0 = vand.u32 4294901760, %v1594_v52  ;;  %v1627_v1 = vsub.f32 %v21_v42, %v1590_v50  ;;  %v2678_v7 = vand.u32 4294901760, %v1599_v53  ;;  %v1638_v8 = vand.u32 4294901760, %v75_v59 }
  0x10   :  { %90 = vmatpush.msra.mxu0 %v1509_v17  ;;  %135 = vmatpush.msra.mxu1 %v134_v43  ;;  %v158_v12 = vand.u32 4294901760, %v157_v56  ;;  %v169_v13 = vsub.f32 %v1579_v46, %v2681_v58  ;;  %v1644_v18 = vand.u32 4294901760, %v15_v61  ;;  %v1647_v26 = vsub.f32 %v19_v48, %v1608_v57 }
  0x11   :  { %236 = vmatpush.msra.mxu2 %v1521_v21  ;;  %286 = vmatpush.msra.mxu3 %v1509_v17  ;;  %v1651_v30 = vand.u32 4294901760, %v13_v2  ;;  %v1653_v31 = vand.u32 4294901760, %v73_v6  ;;  %v164_v34 = vand.u32 4294901760, %v163_v62  ;;  %v175_v37 = vsub.f32 %v1594_v52, %v2679_v0 }
  0x12   :  { %92 = vmatpush.msra.mxu0 %v1528_v25  ;;  %141 = vmatpush.msra.mxu1 %v140_v49  ;;  %v2677_v38 = vand.u32 4294901760, %v1627_v1  ;;  %v1664_v39 = vsub.f32 %v17_v54, %v1623_v63  ;;  %v181_v42 = vsub.f32 %v1599_v53, %v2678_v7  ;;  %v1672_v43 = vsub.f32 %v75_v59, %v1638_v8  ;;  %v67_v59 = vld [vmem:[%s2674_s0 + $0x1b0] sm:$0xff] }
  0x13   :  { %239 = vmatpush.msra.mxu2 %v1538_v29  ;;  %288 = vmatpush.msra.mxu3 %v1528_v25  ;;  %v170_v47 = vand.u32 4294901760, %v169_v13  ;;  %v2680_v48 = vand.u32 4294901760, %v1647_v26  ;;  %v1680_v49 = vsub.f32 %v15_v61, %v1644_v18  ;;  %v1682_v54 = vand.u32 4294901760, %v71_v32  ;;  %v65_v13 = vld [vmem:[%s2674_s0 + $0x1a0] sm:$0xff]  ;;  %v63_v7 = vld [vmem:[%s2674_s0 + $0x190] sm:$0xff] }
  0x14   :  { %94 = vmatpush.msra.mxu0 %v1535_v28  ;;  %147 = vmatpush.msra.mxu1 %v146_v55  ;;  %v1687_v55 = vsub.f32 %v13_v2, %v1651_v30  ;;  %v1690_v56 = vsub.f32 %v73_v6, %v1653_v31  ;;  %v187_v61 = vsub.f32 %v1627_v1, %v2677_v38  ;;  %v2684_v62 = vand.u32 4294901760, %v1664_v39 }
  0x15   :  { %242 = vmatpush.msra.mxu2 %v1565_v40  ;;  %290 = vmatpush.msra.mxu3 %v1535_v28  ;;  %v182_v2 = vand.u32 4294901760, %v181_v42  ;;  %v2687_v6 = vand.u32 4294901760, %v1672_v43  ;;  %v1714_v38 = vsub.f32 %v71_v32, %v1682_v54  ;;  %v1716_v42 = vand.u32 4294901760, %v67_v59 }
  0x16   :  { %96 = vmatpush.msra.mxu0 %v1556_v35  ;;  %153 = vmatpush.msra.mxu1 %v152_v60  ;;  %v176_v60 = vand.u32 4294901760, %v175_v37  ;;  %v2689_v37 = vand.u32 4294901760, %v1680_v49  ;;  %v2691_v0 = vand.u32 4294901760, %v1690_v56  ;;  %v199_v32 = vsub.f32 %v1664_v39, %v2684_v62 }
  0x17   :  { %245 = vmatpush.msra.mxu2 %v1579_v46  ;;  %292 = vmatpush.msra.mxu3 %v1556_v35  ;;  %v1732_v51 = vand.u32 4294901760, %v65_v13  ;;  %v2694_v36 = vand.u32 4294901760, %v1714_v38  ;;  %v1750_v33 = vsub.f32 %v67_v59, %v1716_v42  ;;  %v1757_v27 = vand.u32 4294901760, %v61_v45 }
  0x18   :  { %98 = vmatpush.msra.mxu0 %v1568_v41  ;;  %159 = vmatpush.msra.mxu1 %v158_v12  ;;  %v1700_v12 = vand.u32 4294901760, %v69_v44  ;;  %v205_v62 = vsub.f32 %v1680_v49, %v2689_v37 }
  0x19   :  { %248 = vmatpush.msra.mxu2 %v1594_v52  ;;  %294 = vmatpush.msra.mxu3 %v1568_v41  ;;  %v1768_v24 = vsub.f32 %v65_v13, %v1732_v51  ;;  %v474_v13 = vsub.f32 %v1714_v38, %v2694_v36  ;;  %v2696_v14 = vand.u32 4294901760, %v1750_v33 }
  0x1a   :  { %100 = vmatpush.msra.mxu0 %v1590_v50  ;;  %165 = vmatpush.msra.mxu1 %v164_v34  ;;  %v193_v34 = vsub.f32 %v1647_v26, %v2680_v48  ;;  %v188_v48 = vand.u32 4294901760, %v187_v61  ;;  %v1730_v58 = vsub.f32 %v69_v44, %v1700_v12  ;;  %v1742_v61 = vand.u32 4294901760, %v63_v7 }
  0x1b   :  { %251 = vmatpush.msra.mxu2 %v1599_v53  ;;  %296 = vmatpush.msra.mxu3 %v1590_v50 }
  0x1c   :  { %102 = vmatpush.msra.mxu0 %v1608_v57  ;;  %171 = vmatpush.msra.mxu1 %v170_v47  ;;  %v2693_v47 = vand.u32 4294901760, %v1687_v55  ;;  %v194_v44 = vand.u32 4294901760, %v193_v34  ;;  %v200_v34 = vand.u32 4294901760, %v199_v32  ;;  %v2695_v37 = vand.u32 4294901760, %v1730_v58 }
  0x1d   :  { %254 = vmatpush.msra.mxu2 %v1627_v1  ;;  %298 = vmatpush.msra.mxu3 %v1608_v57  ;;  %v1774_v23 = vsub.f32 %v63_v7, %v1742_v61  ;;  %v206_v32 = vand.u32 4294901760, %v205_v62  ;;  %v55_v62 = vld [vmem:[%s2674_s0 + $0x150] sm:$0xff] }
  0x1e   :  { %104 = vmatpush.msra.mxu0 %v1623_v63  ;;  %177 = vmatpush.msra.mxu1 %v176_v60  ;;  %v462_v60 = vsub.f32 %v1672_v43, %v2687_v6  ;;  %v468_v6 = vsub.f32 %v1690_v56, %v2691_v0  ;;  %v211_v59 = vsub.f32 %v1687_v55, %v2693_v47 }
  0x1f   :  { %257 = vmatpush.msra.mxu2 %v1647_v26  ;;  %300 = vmatpush.msra.mxu3 %v1623_v63  ;;  %v1790_v47 = vsub.f32 %v61_v45, %v1757_v27  ;;  %v480_v36 = vsub.f32 %v1730_v58, %v2695_v37  ;;  %v486_v37 = vsub.f32 %v1750_v33, %v2696_v14  ;;  %v2730_v14 = vand.u32 4294901760, %v1768_v24 }
  0x20   :  { %106 = vmatpush.msra.mxu0 %v1644_v18  ;;  %183 = vmatpush.msra.mxu1 %v182_v2  ;;  %v59_v2 = vld [vmem:[%s2674_s0 + $0x170] sm:$0xff]  ;;  %v463_v0 = vand.u32 4294901760, %v462_v60  ;;  %v2727_v60 = vand.u32 4294901760, %v1503_v15  ;;  %v469_v7 = vand.u32 4294901760, %v468_v6  ;;  %v2728_v6 = vand.u32 4294901760, %v1507_v16 }
  0x21   :  { %260 = vmatpush.msra.mxu2 %v1664_v39  ;;  %302 = vmatpush.msra.mxu3 %v1644_v18  ;;  %v1815_v16 = vand.u32 4294901760, %v55_v62 }
  0x22   :  { %108 = vmatpush.msra.mxu0 %v1651_v30  ;;  %189 = vmatpush.msra.mxu1 %v188_v48  ;;  %v57_v48 = vld [vmem:[%s2674_s0 + $0x160] sm:$0xff] }
  0x23   :  { %263 = vmatpush.msra.mxu2 %v1680_v49  ;;  %304 = vmatpush.msra.mxu3 %v1651_v30 }
  0x24   :  { %315 = vmatpush.msrb.mxu0 %v120_v22  ;;  %195 = vmatpush.msra.mxu1 %v194_v44  ;;  %v1784_v22 = vand.u32 4294901760, %v59_v2  ;;  %v212_v44 = vand.u32 4294901760, %v211_v59  ;;  %v475_v59 = vand.u32 4294901760, %v474_v13  ;;  %v481_v13 = vand.u32 4294901760, %v480_v36  ;;  %v11_v36 = vld [vmem:[%s2675_s1] sm:$0xff] }
  0x25   :  { %266 = vmatpush.msra.mxu2 %v1687_v55  ;;  %464 = vmatpush.msrb.mxu3 %v463_v0  ;;  %v2729_v0 = vand.u32 4294901760, %v1515_v19 }
  0x26   :  { %319 = vmatpush.msrb.mxu0 %v2727_v60  ;;  %201 = vmatpush.msra.mxu1 %v200_v34  ;;  %v1800_v60 = vand.u32 4294901760, %v57_v48  ;;  %v53_v34 = vld [vmem:[%s2674_s0 + $0x140] sm:$0xff]  ;;  %v1813_v15 = vsub.f32 %v59_v2, %v1784_v22  ;;  %v492_v2 = vsub.f32 %v1768_v24, %v2730_v14 }
  0x27   :  { %419 = vmatpush.msrb.mxu2 %v1638_v8  ;;  %470 = vmatpush.msrb.mxu3 %v469_v7  ;;  %v1830_v19 = vand.u32 4294901760, %v53_v34  ;;  %v2731_v7 = vand.u32 4294901760, %v1518_v20 }
  0x28   :  { %323 = vmatpush.msrb.mxu0 %v2728_v6  ;;  %207 = vmatpush.msra.mxu1 %v206_v32  ;;  %v51_v32 = vld [vmem:[%s2674_s0 + $0x130] sm:$0xff]  ;;  %v1828_v45 = vsub.f32 %v57_v48, %v1800_v60  ;;  %v487_v48 = vand.u32 4294901760, %v486_v37  ;;  %v1844_v6 = vsub.f32 %v55_v62, %v1815_v16  ;;  %v49_v37 = vld [vmem:[%s2674_s0 + $0x120] sm:$0xff]  ;;  %v493_v62 = vand.u32 4294901760, %v492_v2 }
  0x29   :  { %421 = vmatpush.msrb.mxu2 %v1653_v31  ;;  %476 = vmatpush.msrb.mxu3 %v475_v59  ;;  %v1846_v20 = vand.u32 4294901760, %v51_v32  ;;  %v1860_v14 = vsub.f32 %v53_v34, %v1830_v19  ;;  %v1875_v59 = vand.u32 4294901760, %v49_v37 }
  0x2a   :  { %327 = vmatpush.msrb.mxu0 %v2729_v0  ;;  %213 = vmatpush.msra.mxu1 %v212_v44  ;;  %v2732_v0 = vand.u32 4294901760, %v1774_v23 }
  0x2b   :  { %423 = vmatpush.msrb.mxu2 %v1682_v54  ;;  %482 = vmatpush.msrb.mxu3 %v481_v13  ;;  %v2737_v13 = vand.u32 4294901760, %v1813_v15 }
  0x2c   :  { %331 = vmatpush.msrb.mxu0 %v2731_v7  ;;  %382 = vmatpush.msrb.mxu1 %v1471_v3  ;;  %v498_v44 = vsub.f32 %v1774_v23, %v2732_v0  ;;  %v2733_v3 = vand.u32 4294901760, %v1521_v21  ;;  %v2734_v7 = vand.u32 4294901760, %v1790_v47  ;;  %v1862_v21 = vand.u32 4294901760, %v11_v36 }
  0x2d   :  { %425 = vmatpush.msrb.mxu2 %v1700_v12  ;;  %488 = vmatpush.msrb.mxu3 %v487_v48  ;;  %v510_v34 = vsub.f32 %v1813_v15, %v2737_v13  ;;  %v2739_v48 = vand.u32 4294901760, %v1828_v45  ;;  %v2742_v13 = vand.u32 4294901760, %v1594_v52  ;;  %v2744_v52 = vand.u32 4294901760, %v1599_v53 }
  0x2e   :  { %335 = vmatpush.msrb.mxu0 %v2733_v3  ;;  %384 = vmatpush.msrb.mxu1 %v1473_v4  ;;  %v504_v0 = vsub.f32 %v1790_v47, %v2734_v7  ;;  %2735 = vst [vmem:[#allocation2_spill] sm:$0xff] %v1862_v21  ;;  %v2736_v4 = vand.u32 4294901760, %v1538_v29  ;;  %v499_v3 = vand.u32 4294901760, %v498_v44  ;;  %v47_v7 = vld [vmem:[%s2674_s0 + $0x110] sm:$0xff]  ;;  %v1878_v29 = vsub.f32 %v51_v32, %v1846_v20 }
  0x2f   :  { %427 = vmatpush.msrb.mxu2 %v1716_v42  ;;  %494 = vmatpush.msrb.mxu3 %v493_v62  ;;  %v1889_v2 = vsub.f32 %v11_v36, %v1862_v21  ;;  %v1891_v32 = vand.u32 4294901760, %v47_v7  ;;  %v2741_v62 = vand.u32 4294901760, %v1844_v6 }
  0x30   :  { %339 = vmatpush.msrb.mxu0 %v2736_v4  ;;  %386 = vmatpush.msrb.mxu1 %v1475_v5  ;;  %v2738_v5 = vand.u32 4294901760, %v1565_v40  ;;  %v505_v44 = vand.u32 4294901760, %v504_v0  ;;  %v516_v4 = vsub.f32 %v1828_v45, %v2739_v48  ;;  %v45_v40 = vld [vmem:[%s2674_s0 + $0x100] sm:$0xff]  ;;  %v511_v0 = vand.u32 4294901760, %v510_v34 }
  0x31   :  { %429 = vmatpush.msrb.mxu2 %v1732_v51  ;;  %500 = vmatpush.msrb.mxu3 %v499_v3  ;;  %v522_v36 = vsub.f32 %v1844_v6, %v2741_v62  ;;  %v1905_v48 = vsub.f32 %v49_v37, %v1875_v59  ;;  %v2743_v3 = vand.u32 4294901760, %v1860_v14  ;;  %v1920_v37 = vsub.f32 %v47_v7, %v1891_v32 }
  0x32   :  { %343 = vmatpush.msrb.mxu0 %v2738_v5  ;;  %388 = vmatpush.msrb.mxu1 %v1486_v9  ;;  %v2740_v9 = vand.u32 4294901760, %v1579_v46  ;;  %v533_v5 = vand.u32 4294901760, %v1878_v29  ;;  %v1910_v46 = vand.u32 4294901760, %v45_v40 }
  0x33   :  { %431 = vmatpush.msrb.mxu2 %v1742_v61  ;;  %506 = vmatpush.msrb.mxu3 %v505_v44  ;;  %v528_v34 = vsub.f32 %v1860_v14, %v2743_v3  ;;  %v523_v44 = vand.u32 4294901760, %v522_v36  ;;  %v539_v7 = vand.u32 4294901760, %v1905_v48  ;;  %v545_v36 = vand.u32 4294901760, %v1920_v37 }
  0x34   :  { %347 = vmatpush.msrb.mxu0 %v2740_v9  ;;  %390 = vmatpush.msrb.mxu1 %v1488_v10  ;;  %v517_v10 = vand.u32 4294901760, %v516_v4  ;;  %v1917_v9 = vand.u32 4294901760, %v1889_v2  ;;  %v534_v4 = vsub.f32 %v1878_v29, %v533_v5  ;;  %v2747_v3 = vand.u32 4294901760, %v1647_v26 }
  0x35   :  { %433 = vmatpush.msrb.mxu2 %v1757_v27  ;;  %512 = vmatpush.msrb.mxu3 %v511_v0  ;;  %v529_v53 = vand.u32 4294901760, %v528_v34 }
  0x36   :  { %351 = vmatpush.msrb.mxu0 %v2742_v13  ;;  %392 = vmatpush.msrb.mxu1 %v1490_v11  ;;  %v12_v11 = vld [vmem:[%s2675_s1 + $0x8] sm:$0xff]  ;;  %v2745_v13 = vand.u32 4294901760, %v1627_v1  ;;  %v112_v0 = vsub.f32 %v1889_v2, %v1917_v9  ;;  %v540_v1 = vsub.f32 %v1905_v48, %v539_v7 }
  0x37   :  { %435 = vmatpush.msrb.mxu2 %v1784_v22  ;;  %518 = vmatpush.msrb.mxu3 %v517_v10  ;;  %v1942_v62 = vand.u32 4294901760, %v12_v11 }
  0x38   :  { %355 = vmatpush.msrb.mxu0 %v2744_v52  ;;  %394 = vmatpush.msrb.mxu1 %v1509_v17  ;;  %v1937_v17 = vsub.f32 %v45_v40, %v1910_v46  ;;  %v2748_v40 = vand.u32 4294901760, %v1664_v39  ;;  %v1957_v26 = vand.u32 4294901760, %v112_v0  ;;  %v2750_v52 = vand.u32 4294901760, %v1680_v49 }
  0x39   :  { %437 = vmatpush.msrb.mxu2 %v1800_v60  ;;  %2746 = vst [vmem:[#allocation3_spill] sm:$0xff] %v1942_v62  ;;  %524 = vmatpush.msrb.mxu3 %v523_v44  ;;  %v1963_v34 = vsub.f32 %v12_v11, %v1942_v62  ;;  %v2751_v39 = vand.u32 4294901760, %v1687_v55 }
  0x3a   :  { %359 = vmatpush.msrb.mxu0 %v2745_v13  ;;  %396 = vmatpush.msrb.mxu1 %v1528_v25  ;;  %v535_v25 = vand.u32 4294901760, %v534_v4  ;;  %v551_v10 = vand.u32 4294901760, %v1937_v17 }
  0x3b   :  { %439 = vmatpush.msrb.mxu2 %v1815_v16  ;;  %530 = vmatpush.msrb.mxu3 %v529_v53  ;;  %2749 = vst [vmem:[#allocation4_spill] sm:$0xff] %v1963_v34 }
  0x3c   :  { %363 = vmatpush.msrb.mxu0 %v2747_v3  ;;  %398 = vmatpush.msrb.mxu1 %v1535_v28  ;;  %v546_v28 = vsub.f32 %v1920_v37, %v545_v36  ;;  %v552_v44 = vsub.f32 %v1937_v17, %v551_v10  ;;  %v26_v3 = vld [vmem:[%s2674_s0 + $0x68] sm:$0xff] }
  0x3d   :  { %441 = vmatpush.msrb.mxu2 %v1830_v19  ;;  %536 = vmatpush.msrb.mxu3 %v535_v25 }
  0x3e   :  { %367 = vmatpush.msrb.mxu0 %v2748_v40  ;;  %400 = vmatpush.msrb.mxu1 %v1556_v35  ;;  %v541_v35 = vand.u32 4294901760, %v540_v1  ;;  %v547_v49 = vand.u32 4294901760, %v546_v28 }
  0x3f   :  { %443 = vmatpush.msrb.mxu2 %v1846_v20  ;;  %114 = vmatmul.f32.vlgmr.msra.gmra.mxu0 %v1957_v26 }
  0x40   :  { %371 = vmatpush.msrb.mxu0 %v2750_v52  ;;  %402 = vmatpush.msrb.mxu1 %v1568_v41  ;;  %v1978_v41 = vand.u32 4294901760, %v1963_v34  ;;  %v24_v52 = vld [vmem:[%s2674_s0 + $0x58] sm:$0xff] }
  0x41   :  { %445 = vmatpush.msrb.mxu2 %v1875_v59  ;;  %542 = vmatpush.msrb.mxu3 %v541_v35 }
  0x42   :  { %375 = vmatpush.msrb.mxu0 %v2751_v39  ;;  %404 = vmatpush.msrb.mxu1 %v1590_v50  ;;  %2752 = vst [vmem:[#allocation5_spill] sm:$0xff] %v1978_v41  ;;  %v553_v50 = vand.u32 4294901760, %v552_v44  ;;  %v453_v55 = vsub.f32 %v1963_v34, %v1978_v41 }
  0x43   :  { %447 = vmatpush.msrb.mxu2 %v1891_v32  ;;  %548 = vmatpush.msrb.mxu3 %v547_v49 }
  0x44   :  { %562 = vmatpush.msra.mxu0 %v1672_v43  ;;  %406 = vmatpush.msrb.mxu1 %v1608_v57  ;;  %v2753_v57 = vand.u32 4294901760, %v1672_v43  ;;  %v1997_v11 = vand.u32 4294901760, %v453_v55  ;;  %v2757_v43 = vand.u32 4294901760, %v1730_v58 }
  0x45   :  { %269 = vmatmul.f32.vlgmr.msra.gmra.mxu2 %v1889_v2  ;;  %308 = vmatmul.f32.vlgmr.msra.gmra.mxu3 %v1917_v9 }
  0x46   :  { %565 = vmatpush.msra.mxu0 %v1690_v56  ;;  %408 = vmatpush.msrb.mxu1 %v1623_v63  ;;  %v2754_v63 = vand.u32 4294901760, %v1690_v56  ;;  %2755 = vst [vmem:[#allocation6_spill] sm:$0xff] %v1997_v11 }
  0x47   :  { %449 = vmatpush.msrb.mxu2 %v1910_v46  ;;  %554 = vmatpush.msrb.mxu3 %v553_v50 }
  0x48   :  { %568 = vmatpush.msra.mxu0 %v1714_v38  ;;  %410 = vmatpush.msrb.mxu1 %v1644_v18  ;;  %v2756_v18 = vand.u32 4294901760, %v1714_v38 }
  0x49   :  { %656 = vmatpush.msra.mxu2 %v2753_v57  ;;  %215 = vmatmul.f32.vlgmr.msra.gmra.mxu1 %v1862_v21 }
  0x4a   :  { %571 = vmatpush.msra.mxu0 %v1730_v58  ;;  %723 = vmatpush.msra.mxu3 %v1638_v8  ;;  %v2759_v58 = vand.u32 4294901760, %v1768_v24 }
  0x4b   :  { %660 = vmatpush.msra.mxu2 %v2754_v63  ;;  %412 = vmatpush.msrb.mxu1 %v1651_v30  ;;  %v2761_v30 = vand.u32 4294901760, %v1790_v47  ;;  %v2194_v63 = vand.u32 4294901760, %v24_v52 }
  0x4c   :  { %574 = vmatpush.msra.mxu0 %v1750_v33  ;;  %725 = vmatpush.msra.mxu3 %v1653_v31 }
  0x4d   :  { %615 = vmatpush.msra.mxu1 %v1638_v8  ;;  %664 = vmatpush.msra.mxu2 %v2756_v18  ;;  %v2758_v8 = vand.u32 4294901760, %v1750_v33  ;;  %v2760_v33 = vand.u32 4294901760, %v1774_v23 }
  0x4e   :  { %455 = vmatmul.f32.vlgmr.msrb.gmra.mxu2 %v1997_v11  ;;  %577 = vmatpush.msra.mxu0 %v1768_v24  ;;  %v2762_v24 = vand.u32 4294901760, %v1813_v15 }
  0x4f   :  { %617 = vmatpush.msra.mxu1 %v1653_v31  ;;  %668 = vmatpush.msra.mxu2 %v2757_v43  ;;  %v2763_v31 = vand.u32 4294901760, %v1828_v45 }
  0x50   :  { %727 = vmatpush.msra.mxu3 %v1682_v54  ;;  %377 = vmatmul.f32.vlgmr.msrb.gmra.mxu0 %v1862_v21 }
  0x51   :  { %556 = vmatmul.f32.vlgmr.msrb.gmra.mxu3 %v1942_v62  ;;  %580 = vmatpush.msra.mxu0 %v1774_v23  ;;  %v44_v23 = vld [vmem:[%s2674_s0 + $0xf8] sm:$0xff] }
  0x52   :  { %619 = vmatpush.msra.mxu1 %v1682_v54  ;;  %672 = vmatpush.msra.mxu2 %v2758_v8  ;;  %v2051_v38 = vand.u32 4294901760, %v44_v23  ;;  %v40_v54 = vld [vmem:[%s2674_s0 + $0xd8] sm:$0xff] }
  0x53   :  { %729 = vmatpush.msra.mxu3 %v1700_v12  ;;  %414 = vmatmul.f32.vlgmr.msrb.gmra.mxu1 %v1862_v21  ;;  %v20_v8 = vld [vmem:[%s2674_s0 + $0x38] sm:$0xff] }
  0x54   :  { %583 = vmatpush.msra.mxu0 %v1790_v47  ;;  %621 = vmatpush.msra.mxu1 %v1700_v12  ;;  %v38_v12 = vld [vmem:[%s2674_s0 + $0xc8] sm:$0xff]  ;;  %v2071_v47 = vand.u32 4294901760, %v40_v54 }
  0x55   :  { %676 = vmatpush.msra.mxu2 %v2759_v58  ;;  %731 = vmatpush.msra.mxu3 %v1716_v42 }
  0x56   :  { %586 = vmatpush.msra.mxu0 %v1813_v15  ;;  %623 = vmatpush.msra.mxu1 %v1716_v42  ;;  %v2765_v42 = vand.u32 4294901760, %v1860_v14  ;;  %v2084_v15 = vand.u32 4294901760, %v38_v12 }
  0x57   :  { %680 = vmatpush.msra.mxu2 %v2760_v33  ;;  %733 = vmatpush.msra.mxu3 %v1732_v51 }
  0x58   :  { %589 = vmatpush.msra.mxu0 %v1828_v45  ;;  %625 = vmatpush.msra.mxu1 %v1732_v51  ;;  %v42_v51 = vld [vmem:[%s2674_s0 + $0xe8] sm:$0xff] }
  0x59   :  { %684 = vmatpush.msra.mxu2 %v2761_v30  ;;  %735 = vmatpush.msra.mxu3 %v1742_v61  ;;  %v2061_v56 = vand.u32 4294901760, %v42_v51  ;;  %v34_v45 = vld [vmem:[%s2674_s0 + $0xa8] sm:$0xff] }
  0x5a   :  { %592 = vmatpush.msra.mxu0 %v1844_v6  ;;  %627 = vmatpush.msra.mxu1 %v1742_v61  ;;  %v2074_v61 = vsub.f32 %v44_v23, %v2051_v38 }
  0x5b   :  { %688 = vmatpush.msra.mxu2 %v2762_v24  ;;  %737 = vmatpush.msra.mxu3 %v1757_v27 }
  0x5c   :  { %595 = vmatpush.msra.mxu0 %v1860_v14  ;;  %629 = vmatpush.msra.mxu1 %v1757_v27  ;;  %v2764_v27 = vand.u32 4294901760, %v1844_v6  ;;  %v2710_v6 = vand.u32 4294901760, %v2074_v61  ;;  %v2101_v14 = vsub.f32 %v40_v54, %v2071_v47 }
  0x5d   :  { %692 = vmatpush.msra.mxu2 %v2763_v31  ;;  %739 = vmatpush.msra.mxu3 %v1784_v22 }
  0x5e   :  { %598 = vmatpush.msra.mxu0 %v1878_v29  ;;  %631 = vmatpush.msra.mxu1 %v1784_v22  ;;  %v36_v22 = vld [vmem:[%s2674_s0 + $0xb8] sm:$0xff]  ;;  %v2111_v29 = vand.u32 4294901760, %v34_v45 }
  0x5f   :  { %696 = vmatpush.msra.mxu2 %v2764_v27  ;;  %741 = vmatpush.msra.mxu3 %v1800_v60  ;;  %v2222_v27 = vand.u32 4294901760, %v20_v8 }
  0x60   :  { %601 = vmatpush.msra.mxu0 %v1905_v48  ;;  %633 = vmatpush.msra.mxu1 %v1800_v60  ;;  %v2087_v60 = vsub.f32 %v42_v51, %v2061_v56  ;;  %v2115_v48 = vsub.f32 %v38_v12, %v2084_v15  ;;  %v18_v51 = vld [vmem:[%s2674_s0 + $0x28] sm:$0xff]  ;;  %v2225_v12 = vsub.f32 %v24_v52, %v2194_v63 }
  0x61   :  { %700 = vmatpush.msra.mxu2 %v2765_v42  ;;  %743 = vmatpush.msra.mxu3 %v1815_v16 }
  0x62   :  { %604 = vmatpush.msra.mxu0 %v1920_v37  ;;  %635 = vmatpush.msra.mxu1 %v1815_v16  ;;  %v2097_v16 = vand.u32 4294901760, %v36_v22  ;;  %v803_v37 = vsub.f32 %v2074_v61, %v2710_v6  ;;  %v2705_v0 = vand.u32 4294901760, %v2115_v48  ;;  %v2699_v52 = vand.u32 4294901760, %v2225_v12 }
  0x63   :  { %704 = vmatpush.msra.mxu2 %v533_v5  ;;  %745 = vmatpush.msra.mxu3 %v1830_v19  ;;  %v2708_v5 = vand.u32 4294901760, %v2087_v60 }
  0x64   :  { %607 = vmatpush.msra.mxu0 %v1937_v17  ;;  %637 = vmatpush.msra.mxu1 %v1830_v19  ;;  %v32_v19 = vld [vmem:[%s2674_s0 + $0x98] sm:$0xff]  ;;  %v2132_v13 = vsub.f32 %v36_v22, %v2097_v16  ;;  %v804_v1 = vand.u32 4294901760, %v803_v37  ;;  %v821_v39 = vsub.f32 %v2115_v48, %v2705_v0 }
  0x65   :  { %708 = vmatpush.msra.mxu2 %v539_v7  ;;  %747 = vmatpush.msra.mxu3 %v1846_v20  ;;  %v2128_v4 = vand.u32 4294901760, %v32_v19  ;;  %v2707_v7 = vand.u32 4294901760, %v2101_v14  ;;  %v809_v17 = vsub.f32 %v2087_v60, %v2708_v5  ;;  %v16_v22 = vld [vmem:[%s2674_s0 + $0x18] sm:$0xff] }
  0x66   :  { %610 = vmatmul.f32.vlgmr.msra.gmra.mxu0 %v1963_v34  ;;  %639 = vmatpush.msra.mxu1 %v1846_v20  ;;  %v30_v20 = vld [vmem:[%s2674_s0 + $0x88] sm:$0xff]  ;;  %v822_v58 = vand.u32 4294901760, %v821_v39 }
  0x67   :  { %760 = vmatpush.msrb.mxu0 %v2051_v38  ;;  %712 = vmatpush.msra.mxu2 %v545_v36  ;;  %v2144_v53 = vand.u32 4294901760, %v30_v20  ;;  %v2148_v36 = vsub.f32 %v34_v45, %v2111_v29  ;;  %v815_v40 = vsub.f32 %v2101_v14, %v2707_v7  ;;  %v2164_v28 = vsub.f32 %v32_v19, %v2128_v4 }
  0x68   :  { %749 = vmatpush.msra.mxu3 %v1875_v59  ;;  %641 = vmatpush.msra.mxu1 %v1875_v59  ;;  %v28_v59 = vld [vmem:[%s2674_s0 + $0x78] sm:$0xff]  ;;  %v810_v35 = vand.u32 4294901760, %v809_v17 }
  0x69   :  { %762 = vmatpush.msrb.mxu0 %v2061_v56  ;;  %716 = vmatpush.msra.mxu2 %v551_v10  ;;  %v2155_v25 = vand.u32 4294901760, %v28_v59  ;;  %v2704_v10 = vand.u32 4294901760, %v2132_v13  ;;  %v2703_v44 = vand.u32 4294901760, %v2148_v36  ;;  %v2180_v49 = vsub.f32 %v30_v20, %v2144_v53 }
  0x6a   :  { %751 = vmatpush.msra.mxu3 %v1891_v32  ;;  %718 = vmatmul.f32.vlgmr.msra.gmra.mxu2 %v1942_v62  ;;  %v816_v55 = vand.u32 4294901760, %v815_v40  ;;  %v2701_v18 = vand.u32 4294901760, %v2164_v28  ;;  %v2237_v20 = vand.u32 4294901760, %v18_v51  ;;  %v2254_v40 = vand.u32 4294901760, %v16_v22 }
  0x6b   :  { %764 = vmatpush.msrb.mxu0 %v2071_v47  ;;  %903 = vmatpush.msrb.mxu2 %v2074_v61  ;;  %v2185_v50 = vsub.f32 %v28_v59, %v2155_v25  ;;  %v827_v57 = vsub.f32 %v2132_v13, %v2704_v10  ;;  %v833_v33 = vsub.f32 %v2148_v36, %v2703_v44  ;;  %v2700_v23 = vand.u32 4294901760, %v2180_v49  ;;  %v76_v59 = vld [vmem:[%s2674_s0 + $0x1f8] sm:$0xff] }
  0x6c   :  { %643 = vmatpush.msra.mxu1 %v1891_v32  ;;  %753 = vmatpush.msra.mxu3 %v1910_v46  ;;  %v2168_v32 = vand.u32 4294901760, %v26_v3  ;;  %v839_v54 = vsub.f32 %v2164_v28, %v2701_v18 }
  0x6d   :  { %755 = vmatmul.f32.vlgmr.msra.gmra.mxu3 %v1942_v62  ;;  %766 = vmatpush.msrb.mxu0 %v2084_v15  ;;  %v2698_v24 = vand.u32 4294901760, %v2185_v50  ;;  %v828_v31 = vand.u32 4294901760, %v827_v57  ;;  %v834_v45 = vand.u32 4294901760, %v833_v33  ;;  %v845_v19 = vsub.f32 %v2180_v49, %v2700_v23 }
  0x6e   :  { %906 = vmatpush.msrb.mxu2 %v2087_v60  ;;  %956 = vmatpush.msrb.mxu3 %v2051_v38  ;;  %v2200_v43 = vsub.f32 %v26_v3, %v2168_v32  ;;  %v14_v3 = vld [vmem:[%s2674_s0 + $0x8] sm:$0xff]  ;;  %v2275_v33 = vsub.f32 %v18_v51, %v2237_v20  ;;  %v2288_v51 = vsub.f32 %v16_v22, %v2254_v40 }
  0x6f   :  { %645 = vmatpush.msra.mxu1 %v1910_v46  ;;  %768 = vmatpush.msrb.mxu0 %v2097_v16  ;;  %v22_v46 = vld [vmem:[%s2674_s0 + $0x48] sm:$0xff]  ;;  %v851_v17 = vsub.f32 %v2185_v50, %v2698_v24  ;;  %v846_v57 = vand.u32 4294901760, %v845_v19 }
  0x70   :  { %649 = vmatmul.f32.vlgmr.msra.gmra.mxu1 %v1978_v41  ;;  %909 = vmatpush.msrb.mxu2 %v2101_v14  ;;  %v2209_v30 = vand.u32 4294901760, %v22_v46  ;;  %v2697_v42 = vand.u32 4294901760, %v2200_v43 }
  0x71   :  { %805 = vmatpush.msrb.mxu1 %v804_v1  ;;  %958 = vmatpush.msrb.mxu3 %v2061_v56  ;;  %v840_v1 = vand.u32 4294901760, %v839_v54  ;;  %v72_v54 = vld [vmem:[%s2674_s0 + $0x1d8] sm:$0xff] }
  0x72   :  { %770 = vmatpush.msrb.mxu0 %v2111_v29  ;;  %912 = vmatpush.msrb.mxu2 %v2115_v48  ;;  %v2240_v37 = vsub.f32 %v22_v46, %v2209_v30  ;;  %v857_v39 = vsub.f32 %v2200_v43, %v2697_v42  ;;  %v2265_v46 = vand.u32 4294901760, %v76_v59  ;;  %v2308_v18 = vand.u32 4294901760, %v72_v54 }
  0x73   :  { %811 = vmatpush.msrb.mxu1 %v810_v35  ;;  %960 = vmatpush.msrb.mxu3 %v2071_v47  ;;  %v2258_v35 = vsub.f32 %v20_v8, %v2222_v27  ;;  %v2271_v8 = vand.u32 4294901760, %v14_v3 }
  0x74   :  { %772 = vmatpush.msrb.mxu0 %v2128_v4  ;;  %915 = vmatpush.msrb.mxu2 %v2132_v13  ;;  %2766 = vst [vmem:[#allocation7_spill] sm:$0xff] %v2265_v46  ;;  %v2298_v24 = vsub.f32 %v76_v59, %v2265_v46  ;;  %v2339_v7 = vsub.f32 %v72_v54, %v2308_v18 }
  0x75   :  { %817 = vmatpush.msrb.mxu1 %v816_v55  ;;  %962 = vmatpush.msrb.mxu3 %v2084_v15  ;;  %v74_v55 = vld [vmem:[%s2674_s0 + $0x1e8] sm:$0xff]  ;;  %v2706_v19 = vand.u32 4294901760, %v2258_v35  ;;  %v2306_v23 = vsub.f32 %v14_v3, %v2271_v8 }
  0x76   :  { %774 = vmatpush.msrb.mxu0 %v2144_v53  ;;  %918 = vmatpush.msrb.mxu2 %v2148_v36  ;;  %v2290_v42 = vand.u32 4294901760, %v74_v55  ;;  %v2714_v10 = vand.u32 4294901760, %v2298_v24 }
  0x77   :  { %823 = vmatpush.msrb.mxu1 %v822_v58  ;;  %964 = vmatpush.msrb.mxu3 %v2097_v16  ;;  %v2702_v58 = vand.u32 4294901760, %v2240_v37  ;;  %v875_v3 = vsub.f32 %v2258_v35, %v2706_v19  ;;  %v2715_v19 = vand.u32 4294901760, %v2306_v23 }
  0x78   :  { %776 = vmatpush.msrb.mxu0 %v2155_v25  ;;  %921 = vmatpush.msrb.mxu2 %v2164_v28  ;;  %2767 = vst [vmem:[#allocation8_spill] sm:$0xff] %v2290_v42  ;;  %v2323_v44 = vsub.f32 %v74_v55, %v2290_v42 }
  0x79   :  { %829 = vmatpush.msrb.mxu1 %v828_v31  ;;  %966 = vmatpush.msrb.mxu3 %v2111_v29  ;;  %v852_v31 = vand.u32 4294901760, %v851_v17  ;;  %v70_v17 = vld [vmem:[%s2674_s0 + $0x1c8] sm:$0xff]  ;;  %v869_v22 = vsub.f32 %v2240_v37, %v2702_v58  ;;  %v2711_v58 = vand.u32 4294901760, %v2288_v51 }
  0x7a   :  { %778 = vmatpush.msrb.mxu0 %v2168_v32  ;;  %924 = vmatpush.msrb.mxu2 %v2180_v49  ;;  %v2315_v59 = vand.u32 4294901760, %v70_v17 }
  0x7b   :  { %835 = vmatpush.msrb.mxu1 %v834_v45  ;;  %968 = vmatpush.msrb.mxu3 %v2128_v4  ;;  %v863_v45 = vsub.f32 %v2225_v12, %v2699_v52  ;;  %v2709_v52 = vand.u32 4294901760, %v2275_v33  ;;  %v887_v54 = vsub.f32 %v2288_v51, %v2711_v58 }
  0x7c   :  { %780 = vmatpush.msrb.mxu0 %v2194_v63  ;;  %927 = vmatpush.msrb.mxu2 %v2185_v50  ;;  %v2344_v5 = vsub.f32 %v70_v17, %v2315_v59  ;;  %v1144_v17 = vsub.f32 %v2298_v24, %v2714_v10  ;;  %v2768_v10 = vand.u32 4294901760, %v2074_v61 }
  0x7d   :  { %841 = vmatpush.msrb.mxu1 %v840_v1  ;;  %970 = vmatpush.msrb.mxu3 %v2144_v53  ;;  %v858_v1 = vand.u32 4294901760, %v857_v39  ;;  %v68_v39 = vld [vmem:[%s2674_s0 + $0x1b8] sm:$0xff]  ;;  %v881_v55 = vsub.f32 %v2275_v33, %v2709_v52  ;;  %v893_v52 = vsub.f32 %v2306_v23, %v2715_v19  ;;  %v2769_v19 = vand.u32 4294901760, %v2323_v44 }
  0x7e   :  { %782 = vmatpush.msrb.mxu0 %v2209_v30  ;;  %930 = vmatpush.msrb.mxu2 %v2200_v43  ;;  %v2328_v0 = vand.u32 4294901760, %v68_v39 }
  0x7f   :  { %847 = vmatpush.msrb.mxu1 %v846_v57  ;;  %972 = vmatpush.msrb.mxu3 %v2155_v25  ;;  %v864_v57 = vand.u32 4294901760, %v863_v45  ;;  %v870_v45 = vand.u32 4294901760, %v869_v22  ;;  %v876_v22 = vand.u32 4294901760, %v875_v3  ;;  %v62_v3 = vld [vmem:[%s2674_s0 + $0x188] sm:$0xff]  ;;  %v882_v58 = vand.u32 4294901760, %v881_v55 }
  0x80   :  { %784 = vmatpush.msrb.mxu0 %v2222_v27  ;;  %933 = vmatpush.msrb.mxu2 %v2225_v12  ;;  %v888_v55 = vand.u32 4294901760, %v887_v54  ;;  %v1150_v41 = vsub.f32 %v2323_v44, %v2769_v19  ;;  %v2388_v61 = vand.u32 4294901760, %v62_v3  ;;  %v58_v54 = vld [vmem:[%s2674_s0 + $0x168] sm:$0xff]  ;;  %v894_v19 = vand.u32 4294901760, %v893_v52  ;;  %v56_v52 = vld [vmem:[%s2674_s0 + $0x158] sm:$0xff] }
  0x81   :  { %853 = vmatpush.msrb.mxu1 %v852_v31  ;;  %974 = vmatpush.msrb.mxu3 %v2168_v32  ;;  %v66_v31 = vld [vmem:[%s2674_s0 + $0x1a8] sm:$0xff] }
  0x82   :  { %786 = vmatpush.msrb.mxu0 %v2237_v20  ;;  %936 = vmatpush.msrb.mxu2 %v2240_v37  ;;  %v2354_v6 = vand.u32 4294901760, %v66_v31  ;;  %v2418_v21 = vsub.f32 %v62_v3, %v2388_v61 }
  0x83   :  { %859 = vmatpush.msrb.mxu1 %v858_v1  ;;  %976 = vmatpush.msrb.mxu3 %v2194_v63  ;;  %v64_v1 = vld [vmem:[%s2674_s0 + $0x198] sm:$0xff] }
  0x84   :  { %788 = vmatpush.msrb.mxu0 %v2254_v40  ;;  %939 = vmatpush.msrb.mxu2 %v2258_v35  ;;  %v2372_v34 = vand.u32 4294901760, %v64_v1  ;;  %v2386_v62 = vsub.f32 %v66_v31, %v2354_v6  ;;  %v2771_v31 = vand.u32 4294901760, %v2339_v7 }
  0x85   :  { %865 = vmatpush.msrb.mxu1 %v864_v57  ;;  %978 = vmatpush.msrb.mxu3 %v2209_v30  ;;  %v2362_v57 = vsub.f32 %v68_v39, %v2328_v0  ;;  %v1145_v39 = vand.u32 4294901760, %v1144_v17  ;;  %v2772_v17 = vand.u32 4294901760, %v2101_v14  ;;  %v2420_v14 = vand.u32 4294901760, %v58_v54 }
  0x86   :  { %790 = vmatpush.msrb.mxu0 %v2271_v8  ;;  %942 = vmatpush.msrb.mxu2 %v2275_v33  ;;  %v1156_v11 = vsub.f32 %v2339_v7, %v2771_v31 }
  0x87   :  { %871 = vmatpush.msrb.mxu1 %v870_v45  ;;  %980 = vmatpush.msrb.mxu3 %v2222_v27  ;;  %v60_v45 = vld [vmem:[%s2674_s0 + $0x178] sm:$0xff] }
  0x88   :  { %997 = vmatpush.msra.mxu0 %v2768_v10  ;;  %945 = vmatpush.msrb.mxu2 %v2288_v51  ;;  %v2770_v10 = vand.u32 4294901760, %v2087_v60  ;;  %v2402_v60 = vsub.f32 %v64_v1, %v2372_v34  ;;  %v1151_v1 = vand.u32 4294901760, %v1150_v41  ;;  %v54_v41 = vld [vmem:[%s2674_s0 + $0x148] sm:$0xff] }
  0x89   :  { %877 = vmatpush.msrb.mxu1 %v876_v22  ;;  %982 = vmatpush.msrb.mxu3 %v2237_v20  ;;  %v2773_v22 = vand.u32 4294901760, %v2344_v5 }
  0x8a   :  { %1001 = vmatpush.msra.mxu0 %v2770_v10  ;;  %948 = vmatpush.msrb.mxu2 %v2306_v23  ;;  %v2404_v10 = vand.u32 4294901760, %v60_v45  ;;  %v1179_v3 = vand.u32 4294901760, %v2402_v60 }
  0x8b   :  { %883 = vmatpush.msrb.mxu1 %v882_v58  ;;  %984 = vmatpush.msrb.mxu3 %v2254_v40  ;;  %v1162_v58 = vsub.f32 %v2344_v5, %v2773_v22  ;;  %v2775_v22 = vand.u32 4294901760, %v2362_v57 }
  0x8c   :  { %1005 = vmatpush.msra.mxu0 %v2772_v17  ;;  %1101 = vmatpush.msra.mxu2 %v2265_v46  ;;  %v2774_v17 = vand.u32 4294901760, %v2115_v48  ;;  %v2433_v31 = vsub.f32 %v60_v45, %v2404_v10  ;;  %v2435_v48 = vand.u32 4294901760, %v56_v52  ;;  %v2725_v45 = vand.u32 4294901760, %v2418_v21 }
  0x8d   :  { %889 = vmatpush.msrb.mxu1 %v888_v55  ;;  %986 = vmatpush.msrb.mxu3 %v2271_v8  ;;  %v1168_v46 = vsub.f32 %v2362_v57, %v2775_v22  ;;  %v1157_v55 = vand.u32 4294901760, %v1156_v11  ;;  %v1163_v22 = vand.u32 4294901760, %v1162_v58  ;;  %v2777_v11 = vand.u32 4294901760, %v2386_v62 }
  0x8e   :  { %1009 = vmatpush.msra.mxu0 %v2774_v17  ;;  %1103 = vmatpush.msra.mxu2 %v2290_v42  ;;  %v2776_v17 = vand.u32 4294901760, %v2132_v13  ;;  %v52_v42 = vld [vmem:[%s2674_s0 + $0x138] sm:$0xff]  ;;  %v2451_v13 = vand.u32 4294901760, %v54_v41 }
  0x8f   :  { %1146 = vmatpush.msra.mxu3 %v1145_v39  ;;  %895 = vmatpush.msrb.mxu1 %v894_v19  ;;  %v1174_v39 = vsub.f32 %v2386_v62, %v2777_v11  ;;  %v2449_v19 = vsub.f32 %v58_v54, %v2420_v14  ;;  %v1169_v58 = vand.u32 4294901760, %v1168_v46  ;;  %v2462_v54 = vsub.f32 %v56_v52, %v2435_v48 }
  0x90   :  { %1013 = vmatpush.msra.mxu0 %v2776_v17  ;;  %1105 = vmatpush.msra.mxu2 %v2308_v18  ;;  %v1191_v17 = vand.u32 4294901760, %v2433_v31  ;;  %v2464_v11 = vand.u32 4294901760, %v52_v42  ;;  %v1186_v52 = vsub.f32 %v2418_v21, %v2725_v45 }
  0x91   :  { %1064 = vmatpush.msra.mxu1 %v2051_v38  ;;  %1152 = vmatpush.msra.mxu3 %v1151_v1  ;;  %v2778_v38 = vand.u32 4294901760, %v2148_v36  ;;  %v1180_v1 = vsub.f32 %v2402_v60, %v1179_v3  ;;  %v50_v36 = vld [vmem:[%s2674_s0 + $0x128] sm:$0xff]  ;;  %v1175_v46 = vand.u32 4294901760, %v1174_v39  ;;  %v1203_v39 = vand.u32 4294901760, %v2462_v54 }
  0x92   :  { %1107 = vmatpush.msra.mxu2 %v2315_v59  ;;  %v2494_v45 = vsub.f32 %v52_v42, %v2464_v11  ;;  %796 = vmatmul.f32.vlgmr.msrb.gmra.mxu0 %v1957_v26  ;;  %v2789_v26 = vand.u32 4294901760, %v2298_v24 }
  0x93   :  { %1017 = vmatpush.msra.mxu0 %v2778_v38  ;;  %1066 = vmatpush.msra.mxu1 %v2061_v56  ;;  %v2779_v56 = vand.u32 4294901760, %v2164_v28  ;;  %v2478_v38 = vsub.f32 %v54_v41, %v2451_v13  ;;  %v48_v28 = vld [vmem:[%s2674_s0 + $0x118] sm:$0xff]  ;;  %v1192_v41 = vsub.f32 %v2433_v31, %v1191_v17 }
  0x94   :  { %1158 = vmatpush.msra.mxu3 %v1157_v55  ;;  %1109 = vmatpush.msra.mxu2 %v2328_v0  ;;  %v2726_v55 = vand.u32 4294901760, %v2449_v19 }
  0x95   :  { %1021 = vmatpush.msra.mxu0 %v2779_v56  ;;  %1068 = vmatpush.msra.mxu1 %v2071_v47  ;;  %v2780_v56 = vand.u32 4294901760, %v2180_v49  ;;  %v2486_v47 = vand.u32 4294901760, %v50_v36  ;;  %v2781_v49 = vand.u32 4294901760, %v2185_v50  ;;  %v2782_v50 = vand.u32 4294901760, %v2200_v43 }
  0x96   :  { %1164 = vmatpush.msra.mxu3 %v1163_v22  ;;  %1111 = vmatpush.msra.mxu2 %v2354_v6  ;;  %v1181_v22 = vand.u32 4294901760, %v1180_v1  ;;  %v1187_v1 = vand.u32 4294901760, %v1186_v52  ;;  %v1198_v42 = vsub.f32 %v2449_v19, %v2726_v55  ;;  %v1215_v52 = vand.u32 4294901760, %v2494_v45 }
  0x97   :  { %1025 = vmatpush.msra.mxu0 %v2780_v56  ;;  %1070 = vmatpush.msra.mxu1 %v2084_v15  ;;  %v2499_v15 = vand.u32 4294901760, %v48_v28  ;;  %v1209_v56 = vand.u32 4294901760, %v2478_v38  ;;  %v2783_v43 = vand.u32 4294901760, %v2225_v12 }
  0x98   :  { %1170 = vmatpush.msra.mxu3 %v1169_v58  ;;  %v46_v58 = vld [vmem:[%s2674_s0 + $0x108] sm:$0xff]  ;;  %1113 = vmatpush.msra.mxu2 %v2372_v34 }
  0x99   :  { %1029 = vmatpush.msra.mxu0 %v2781_v49  ;;  %1072 = vmatpush.msra.mxu1 %v2097_v16  ;;  %v2513_v16 = vsub.f32 %v50_v36, %v2486_v47  ;;  %v1193_v49 = vand.u32 4294901760, %v1192_v41  ;;  %v2520_v55 = vand.u32 4294901760, %v46_v58  ;;  %v1199_v36 = vand.u32 4294901760, %v1198_v42 }
  0x9a   :  { %1176 = vmatpush.msra.mxu3 %v1175_v46  ;;  %1115 = vmatpush.msra.mxu2 %v2388_v61  ;;  %v1204_v46 = vsub.f32 %v2462_v54, %v1203_v39  ;;  %v2784_v41 = vand.u32 4294901760, %v2240_v37  ;;  %v2785_v42 = vand.u32 4294901760, %v2258_v35 }
  0x9b   :  { %1033 = vmatpush.msra.mxu0 %v2782_v50  ;;  %1074 = vmatpush.msra.mxu1 %v2111_v29  ;;  %v2526_v29 = vsub.f32 %v48_v28, %v2499_v15  ;;  %v1221_v12 = vand.u32 4294901760, %v2513_v16  ;;  %v1216_v28 = vsub.f32 %v2494_v45, %v1215_v52  ;;  %v2786_v50 = vand.u32 4294901760, %v2275_v33 }
  0x9c   :  { %1182 = vmatpush.msra.mxu3 %v1181_v22  ;;  %1117 = vmatpush.msra.mxu2 %v2404_v10  ;;  %v1210_v22 = vsub.f32 %v2478_v38, %v1209_v56 }
  0x9d   :  { %1037 = vmatpush.msra.mxu0 %v2783_v43  ;;  %1076 = vmatpush.msra.mxu1 %v2128_v4  ;;  %v1205_v4 = vand.u32 4294901760, %v1204_v46  ;;  %v1217_v35 = vand.u32 4294901760, %v1216_v28 }
  0x9e   :  { %1188 = vmatpush.msra.mxu3 %v1187_v1  ;;  %1119 = vmatpush.msra.mxu2 %v2420_v14  ;;  %v2541_v1 = vsub.f32 %v46_v58, %v2520_v55  ;;  %v1211_v37 = vand.u32 4294901760, %v1210_v22  ;;  %v1222_v58 = vsub.f32 %v2513_v16, %v1221_v12 }
  0x9f   :  { %1041 = vmatpush.msra.mxu0 %v2784_v41  ;;  %1078 = vmatpush.msra.mxu1 %v2144_v53  ;;  %v1227_v53 = vand.u32 4294901760, %v2526_v29 }
  0xa0   :  { %1194 = vmatpush.msra.mxu3 %v1193_v49  ;;  %1121 = vmatpush.msra.mxu2 %v2435_v48  ;;  %v2787_v49 = vand.u32 4294901760, %v2288_v51  ;;  %v1223_v46 = vand.u32 4294901760, %v1222_v58 }
  0xa1   :  { %1045 = vmatpush.msra.mxu0 %v2785_v42  ;;  %1080 = vmatpush.msra.mxu1 %v2155_v25  ;;  %v1233_v25 = vand.u32 4294901760, %v2541_v1  ;;  %v1228_v33 = vsub.f32 %v2526_v29, %v1227_v53 }
  0xa2   :  { %1200 = vmatpush.msra.mxu3 %v1199_v36  ;;  %1123 = vmatpush.msra.mxu2 %v2451_v13 }
  0xa3   :  { %1049 = vmatpush.msra.mxu0 %v2786_v50  ;;  %1082 = vmatpush.msra.mxu1 %v2168_v32  ;;  %v2788_v32 = vand.u32 4294901760, %v2306_v23  ;;  %v1229_v51 = vand.u32 4294901760, %v1228_v33  ;;  %v2790_v23 = vld [vmem:[#allocation2_spill] sm:$0xff] }
  0xa4   :  { %1206 = vmatpush.msra.mxu3 %v1205_v4  ;;  %1125 = vmatpush.msra.mxu2 %v2464_v11 }
  0xa5   :  { %1053 = vmatpush.msra.mxu0 %v2787_v49  ;;  %1084 = vmatpush.msra.mxu1 %v2194_v63  ;;  %v1234_v63 = vsub.f32 %v2541_v1, %v1233_v25 }
  0xa6   :  { %1212 = vmatpush.msra.mxu3 %v1211_v37  ;;  %1127 = vmatpush.msra.mxu2 %v2486_v47 }
  0xa7   :  { %1057 = vmatpush.msra.mxu0 %v2788_v32  ;;  %1086 = vmatpush.msra.mxu1 %v2209_v30  ;;  %v1235_v30 = vand.u32 4294901760, %v1234_v63 }
  0xa8   :  { %1218 = vmatpush.msra.mxu3 %v1217_v35  ;;  %1129 = vmatpush.msra.mxu2 %v2499_v15 }
  0xa9   :  { %1088 = vmatpush.msra.mxu1 %v2222_v27  ;;  %1244 = vmatpush.msrb.mxu0 %v2298_v24  ;;  %v2792_v27 = vld [vmem:[#allocation7_spill] sm:$0xff]  ;;  %v2794_v24 = vld [vmem:[#allocation8_spill] sm:$0xff] }
  0xaa   :  { %1224 = vmatpush.msra.mxu3 %v1223_v46  ;;  %951 = vmatmul.f32.vlgmr.msrb.gmra.mxu2 %v1889_v2  ;;  %v2791_v2 = vand.u32 4294901760, %v2323_v44 }
  0xab   :  { %1247 = vmatpush.msrb.mxu0 %v2323_v44  ;;  %1090 = vmatpush.msra.mxu1 %v2237_v20  ;;  %v2795_v20 = vld [vmem:[#allocation6_spill] sm:$0xff]  ;;  %v2796_v44 = vand.u32 4294901760, %v2344_v5 }
  0xac   :  { %1131 = vmatpush.msra.mxu2 %v2520_v55  ;;  %1230 = vmatpush.msra.mxu3 %v1229_v51 }
  0xad   :  { %990 = vmatmul.f32.vlgmr.msrb.gmra.mxu3 %v1917_v9  ;;  %1250 = vmatpush.msrb.mxu0 %v2339_v7  ;;  %v2793_v9 = vand.u32 4294901760, %v2339_v7  ;;  %v2798_v7 = vand.u32 4294901760, %v2362_v57 }
  0xae   :  { %1338 = vmatpush.msrb.mxu2 %v2789_v26  ;;  %1092 = vmatpush.msra.mxu1 %v2254_v40  ;;  %v2797_v40 = vld [vmem:[#allocation3_spill] sm:$0xff] }
  0xaf   :  { %1236 = vmatpush.msra.mxu3 %v1235_v30  ;;  %897 = vmatmul.f32.vlgmr.msrb.gmra.mxu1 %v2790_v23 }
  0xb0   :  { %1253 = vmatpush.msrb.mxu0 %v2344_v5  ;;  %1342 = vmatpush.msrb.mxu2 %v2791_v2  ;;  %v2799_v5 = vand.u32 4294901760, %v2386_v62 }
  0xb1   :  { %1405 = vmatpush.msrb.mxu3 %v2792_v27  ;;  %1094 = vmatpush.msra.mxu1 %v2271_v8  ;;  %v2803_v8 = vld [vmem:[#allocation5_spill] sm:$0xff] }
  0xb2   :  { %1256 = vmatpush.msrb.mxu0 %v2362_v57  ;;  %1346 = vmatpush.msrb.mxu2 %v2793_v9 }
  0xb3   :  { %1297 = vmatpush.msrb.mxu1 %v2792_v27  ;;  %1407 = vmatpush.msrb.mxu3 %v2794_v24 }
  0xb4   :  { %1137 = vmatmul.f32.vlgmr.msra.gmra.mxu2 %v2795_v20  ;;  %1259 = vmatpush.msrb.mxu0 %v2386_v62  ;;  %v2801_v62 = vand.u32 4294901760, %v2449_v19 }
  0xb5   :  { %1299 = vmatpush.msrb.mxu1 %v2794_v24  ;;  %1350 = vmatpush.msrb.mxu2 %v2796_v44 }
  0xb6   :  { %1409 = vmatpush.msrb.mxu3 %v2308_v18  ;;  %1059 = vmatmul.f32.vlgmr.msra.gmra.mxu0 %v2790_v23 }
  0xb7   :  { %1238 = vmatmul.f32.vlgmr.msra.gmra.mxu3 %v2797_v40  ;;  %1262 = vmatpush.msrb.mxu0 %v2402_v60 }
  0xb8   :  { %1301 = vmatpush.msrb.mxu1 %v2308_v18  ;;  %1354 = vmatpush.msrb.mxu2 %v2798_v7  ;;  %v2800_v18 = vand.u32 4294901760, %v2418_v21 }
  0xb9   :  { %1411 = vmatpush.msrb.mxu3 %v2315_v59  ;;  %1096 = vmatmul.f32.vlgmr.msra.gmra.mxu1 %v2790_v23 }
  0xba   :  { %1265 = vmatpush.msrb.mxu0 %v2418_v21  ;;  %1303 = vmatpush.msrb.mxu1 %v2315_v59  ;;  %v2802_v21 = vld [vmem:[#allocation4_spill] sm:$0xff] }
  0xbb   :  { %1358 = vmatpush.msrb.mxu2 %v2799_v5  ;;  %1413 = vmatpush.msrb.mxu3 %v2328_v0 }
  0xbc   :  { %1268 = vmatpush.msrb.mxu0 %v2433_v31  ;;  %1305 = vmatpush.msrb.mxu1 %v2328_v0 }
  0xbd   :  { %1362 = vmatpush.msrb.mxu2 %v1179_v3  ;;  %1415 = vmatpush.msrb.mxu3 %v2354_v6 }
  0xbe   :  { %1271 = vmatpush.msrb.mxu0 %v2449_v19  ;;  %1307 = vmatpush.msrb.mxu1 %v2354_v6  ;;  %v115_v6 = vpop.f32.mrf.mxu0 }
  0xbf   :  { %1366 = vmatpush.msrb.mxu2 %v2800_v18  ;;  %1417 = vmatpush.msrb.mxu3 %v2372_v34 }
  0xc0   :  { %1274 = vmatpush.msrb.mxu0 %v2462_v54  ;;  %1309 = vmatpush.msrb.mxu1 %v2372_v34 }
  0xc1   :  { %1370 = vmatpush.msrb.mxu2 %v1191_v17  ;;  %1419 = vmatpush.msrb.mxu3 %v2388_v61 }
  0xc2   :  { %1277 = vmatpush.msrb.mxu0 %v2478_v38  ;;  %1311 = vmatpush.msrb.mxu1 %v2388_v61 }
  0xc3   :  { %1374 = vmatpush.msrb.mxu2 %v2801_v62  ;;  %1421 = vmatpush.msrb.mxu3 %v2404_v10 }
  0xc4   :  { %1280 = vmatpush.msrb.mxu0 %v2494_v45  ;;  %1313 = vmatpush.msrb.mxu1 %v2404_v10 }
  0xc5   :  { %1378 = vmatpush.msrb.mxu2 %v1203_v39  ;;  %1423 = vmatpush.msrb.mxu3 %v2420_v14 }
  0xc6   :  { %1283 = vmatpush.msrb.mxu0 %v2513_v16  ;;  %1315 = vmatpush.msrb.mxu1 %v2420_v14  ;;  %v216_v34 = vpop.f32.mrf.mxu1 }
  0xc7   :  { %1382 = vmatpush.msrb.mxu2 %v1209_v56  ;;  %1425 = vmatpush.msrb.mxu3 %v2435_v48  ;;  %v217_v0 = vadd.f32 %v216_v34, %v115_v6 }
  0xc8   :  { %1286 = vmatpush.msrb.mxu0 %v2526_v29  ;;  %1317 = vmatpush.msrb.mxu1 %v2435_v48  ;;  %v270_v59 = vpop.f32.mrf.mxu2  ;;  %v309_v61 = vpop.f32.mrf.mxu3 }
  0xc9   :  { %1386 = vmatpush.msrb.mxu2 %v1215_v52  ;;  %1427 = vmatpush.msrb.mxu3 %v2451_v13  ;;  %v271_v57 = vadd.f32 %v270_v59, %v217_v0 }
  0xca   :  { %1289 = vmatpush.msrb.mxu0 %v2541_v1  ;;  %1319 = vmatpush.msrb.mxu1 %v2451_v13 }
  0xcb   :  { %1390 = vmatpush.msrb.mxu2 %v1221_v12  ;;  %1429 = vmatpush.msrb.mxu3 %v2464_v11  ;;  %v310_v60 = vadd.f32 %v309_v61, %v271_v57 }
  0xcc   :  { %1292 = vmatmul.f32.vlgmr.msrb.gmra.mxu0 %v2802_v21  ;;  %1321 = vmatpush.msrb.mxu1 %v2464_v11 }
  0xcd   :  { %1394 = vmatpush.msrb.mxu2 %v1227_v53  ;;  %1431 = vmatpush.msrb.mxu3 %v2486_v47  ;;  %v378_v10 = vpop.f32.mrf.mxu0 }
  0xce   :  { %1323 = vmatpush.msrb.mxu1 %v2486_v47  ;;  %v379_v31 = vadd.f32 %v378_v10, %v310_v60 }
  0xcf   :  { %1398 = vmatpush.msrb.mxu2 %v1233_v25  ;;  %1433 = vmatpush.msrb.mxu3 %v2499_v15 }
  0xd0   :  { %1400 = vmatmul.f32.vlgmr.msrb.gmra.mxu2 %v2797_v40  ;;  %1325 = vmatpush.msrb.mxu1 %v2499_v15  ;;  %v415_v14 = vpop.f32.mrf.mxu1 }
  0xd1   :  { %1435 = vmatpush.msrb.mxu3 %v2520_v55  ;;  %v416_v3 = vadd.f32 %v415_v14, %v379_v31  ;;  %v456_v48 = vpop.f32.mrf.mxu2 }
  0xd2   :  { %1437 = vmatmul.f32.vlgmr.msrb.gmra.mxu3 %v2797_v40  ;;  %1327 = vmatpush.msrb.mxu1 %v2520_v55 }
  0xd3   :  { %1331 = vmatmul.f32.vlgmr.msrb.gmra.mxu1 %v2803_v8  ;;  %v457_v45 = vadd.f32 %v456_v48, %v416_v3 }
  0xd4   :  { %v557_v19 = vpop.f32.mrf.mxu3 }
  0xd5   :  { %v558_v17 = vadd.f32 %v557_v19, %v457_v45 }
  0xe3   :  { %v611_v13 = vpop.f32.mrf.mxu0 }
  0xe4   :  { %v612_v54 = vadd.f32 %v611_v13, %v558_v17 }
  0xed   :  { %v650_v11 = vpop.f32.mrf.mxu1  ;;  %v719_v38 = vpop.f32.mrf.mxu2 }
  0xee   :  { %v651_v47 = vadd.f32 %v650_v11, %v612_v54 }
  0xf0   :  { %v720_v55 = vadd.f32 %v719_v38, %v651_v47  ;;  %v756_v39 = vpop.f32.mrf.mxu3 }
  0xf2   :  { %v757_v15 = vadd.f32 %v756_v39, %v720_v55 }
  0xf4   :  { %1441 = vst [vmem:[%s2676_s2] sm:$0xff] %v757_v15 }
 0x10f   :  { %v797_v16 = vpop.f32.mrf.mxu0 }
 0x12c   :  { %v898_v56 = vpop.f32.mrf.mxu1 }
 0x12d   :  { %v899_v52 = vadd.f32 %v898_v56, %v797_v16  ;;  %v952_v43 = vpop.f32.mrf.mxu2 }
 0x12f   :  { %v953_v29 = vadd.f32 %v952_v43, %v899_v52 }
 0x130   :  { %v991_v36 = vpop.f32.mrf.mxu3 }
 0x131   :  { %v992_v22 = vadd.f32 %v991_v36, %v953_v29 }
 0x133   :  { %v1060_v41 = vpop.f32.mrf.mxu0 }
 0x134   :  { %v1061_v12 = vadd.f32 %v1060_v41, %v992_v22 }
 0x136   :  { %v1097_v4 = vpop.f32.mrf.mxu1 }
 0x137   :  { %v1098_v28 = vadd.f32 %v1097_v4, %v1061_v12  ;;  %v1138_v1 = vpop.f32.mrf.mxu2 }
 0x139   :  { %v1139_v42 = vadd.f32 %v1138_v1, %v1098_v28 }
 0x13a   :  { %v1239_v53 = vpop.f32.mrf.mxu3 }
 0x13b   :  { %v1240_v50 = vadd.f32 %v1239_v53, %v1139_v42 }
 0x149   :  { %v1293_v37 = vpop.f32.mrf.mxu0 }
 0x14a   :  { %v1294_v58 = vadd.f32 %v1293_v37, %v1240_v50 }
 0x150   :  { %v1332_v35 = vpop.f32.mrf.mxu1 }
 0x151   :  { %v1333_v25 = vadd.f32 %v1332_v35, %v1294_v58 }
 0x153   :  { %v1401_v49 = vpop.f32.mrf.mxu2 }
 0x154   :  { %v1402_v33 = vadd.f32 %v1401_v49, %v1333_v25 }
 0x155   :  { %v1438_v32 = vpop.f32.mrf.mxu3 }
 0x156   :  { %v1439_v46 = vadd.f32 %v1438_v32, %v1402_v33 }
 0x158   :  { %1442 = vst [vmem:[%s2676_s2 + $0x8] sm:$0xff] %v1439_v46 }

</bundles_post_ra>
